<compile_context>
chip_gen: v7x
topology: tpu7x:2x2x1
jax: 0.10.0
libtpu: 0.0.40
codegen_flags: <defaults>
</compile_context>

<pallas_src>
import jax
import jax.numpy as jnp
from jax.experimental import pallas as pl
from jax.experimental.pallas import tpu as pltpu

LANE = 128


# ----------------------------------------------------------------------------
# Kernel: fused masked ActNorm2d forward + masked logdet update
#   grid = (B, R // TR); one (1, TR, 128) slab of one sample per step.
# ----------------------------------------------------------------------------
def masked_actnorm_kernel(mask_ref, logdet_ref, dld_ref,      # SMEM: (B,) i32, (B,) f32, (1,) f32
                          x_ref, bias_ref, scale_ref,          # VMEM: (1,TR,128), (TR,1), (TR,1)
                          o_ref, ld_ref):                      # VMEM: (1,TR,128), (1,1,128)
    b = pl.program_id(0)
    r = pl.program_id(1)
    m = mask_ref[b]                         # per-sample mask as 0/1 int32 (SMEM scalar)

    @pl.when(m != 0)
    def _():
        # ActNorm forward: (x + bias) * exp(logs); exp precomputed wrapper-side.
        y = (x_ref[...] + bias_ref[...][None]) * scale_ref[...][None]
        o_ref[...] = y.astype(o_ref.dtype)

    @pl.when(m == 0)
    def _():
        o_ref[...] = x_ref[...]             # unmasked sample: pass input through untouched

    @pl.when(r == 0)
    def _():
        # logdet' = logdet + mask * sum(logs) * H * W   (dld is the exact scalar)
        ld = logdet_ref[b] + dld_ref[0] * m.astype(jnp.float32)
        ld_ref[...] = jnp.full(ld_ref.shape, ld, dtype=ld_ref.dtype)   # lane-padded splat


def _pick_row_tile(R, cap=1024):
    """Largest row-tile that is a multiple of 8, divides R, and is <= cap.
    Falls back to the full extent when R itself is small / not 8-aligned."""
    if R % 8 != 0 or R <= cap:
        return R
    tr = cap - (cap % 8)
    while R % tr != 0:
        tr -= 8
    return tr


# ----------------------------------------------------------------------------
# Wrapper: layout plumbing + C-element parameter prep only
# ----------------------------------------------------------------------------
def masked_actnorm2d(x, mask, logdet, bias, logs):
    """x: (B,C,H,W) NCHW; mask: (B,) bool; logdet: (B,) f32; bias/logs: (C,) f32.
    Returns (out (B,C,H,W), logdet' (B,))."""
    assert mask.dtype == jnp.bool_, "mask must be boolean (matches torch assert)"
    B, C, H, W = x.shape
    pix = H * W
    assert pix % LANE == 0, "TODO(synk): pad H*W to a multiple of 128 for odd shapes"
    R = (C * pix) // LANE
    rows_per_ch = pix // LANE

    # parameter prep: C-element work only (no per-element compute hoisted)
    bias_f = bias.astype(jnp.float32).reshape(C)
    logs_f = logs.astype(jnp.float32).reshape(C)
    bias_col = jnp.repeat(bias_f, rows_per_ch).reshape(R, 1)            # (R, 1)
    scale_col = jnp.repeat(jnp.exp(logs_f), rows_per_ch).reshape(R, 1)  # (R, 1) = exp(logs)
    dld = (jnp.sum(logs_f) * pix).reshape(1)                            # exact sum(logs)*pixels
    mask_i32 = mask.astype(jnp.int32)                                   # (B,)
    logdet_f = logdet.astype(jnp.float32)                               # (B,)

    x_view = x.reshape(B, R, LANE)                                      # lane-dense slab view

    TR = _pick_row_tile(R)
    grid = (B, R // TR)

    out, ld = pl.pallas_call(
        masked_actnorm_kernel,
        out_shape=(jax.ShapeDtypeStruct((B, R, LANE), x.dtype),
                   jax.ShapeDtypeStruct((B, 1, LANE), jnp.float32)),
        grid=grid,
        in_specs=[
            pl.BlockSpec(memory_space=pltpu.MemorySpace.SMEM),          # mask   (B,) i32
            pl.BlockSpec(memory_space=pltpu.MemorySpace.SMEM),          # logdet (B,) f32
            pl.BlockSpec(memory_space=pltpu.MemorySpace.SMEM),          # dld    (1,) f32
            pl.BlockSpec((1, TR, LANE), lambda b, r: (b, r, 0)),        # x slab
            pl.BlockSpec((TR, 1), lambda b, r: (r, 0)),                 # bias column
            pl.BlockSpec((TR, 1), lambda b, r: (r, 0)),                 # scale column
        ],
        out_specs=(pl.BlockSpec((1, TR, LANE), lambda b, r: (b, r, 0)),
                   pl.BlockSpec((1, 1, LANE), lambda b, r: (b, 0, 0))),
        compiler_params=pltpu.CompilerParams(
            # row axis is "arbitrary": the logdet output block is constant along it.
            dimension_semantics=("parallel", "arbitrary")),
    )(mask_i32, logdet_f, dld, x_view, bias_col, scale_col)

    return out.reshape(B, C, H, W), ld[:, 0, 0]


# ----------------------------------------------------------------------------
# Pure-JAX reference (same math) for a tight sanity check
# ----------------------------------------------------------------------------
def reference_masked_actnorm2d(x, mask, logdet, bias, logs):
    B, C, H, W = x.shape
    y = (x + bias.reshape(1, C, 1, 1)) * jnp.exp(logs.reshape(1, C, 1, 1))
    dld = jnp.sum(logs) * (H * W)
    out = jnp.where(mask.reshape(B, 1, 1, 1), y, x)
    ld = jnp.where(mask, logdet + dld, logdet)
    return out, ld


# ----------------------------------------------------------------------------
if __name__ == "__main__":
    B, C, H, W = 2, 4, 16, 16           # x: (2, 4, 16, 16) NCHW, as in the module spec

    key = jax.random.PRNGKey(0)
    k = jax.random.split(key, 4)

    x = jax.random.normal(k[0], (B, C, H, W), jnp.float32)
    # as-if-trained parameters (torch inits them to zero before data-dependent init)
    bias = 0.1 * jax.random.normal(k[1], (C,), jnp.float32)
    logs = 0.1 * jax.random.normal(k[2], (C,), jnp.float32)
    logdet0 = jax.random.normal(k[3], (B,), jnp.float32)
    mask = jnp.array([True, False])     # per-sample boolean mask (exercises both branches)

    fwd = jax.jit(masked_actnorm2d)
    out, logdet = fwd(x, mask, logdet0, bias, logs)
    out = jax.block_until_ready(out)
    logdet = jax.block_until_ready(logdet)

    ref_out, ref_ld = reference_masked_actnorm2d(x, mask, logdet0, bias, logs)
    assert out.shape == (B, C, H, W) and logdet.shape == (B,)
    assert bool(jnp.allclose(out, ref_out, rtol=1e-5, atol=1e-5))
    assert bool(jnp.allclose(logdet, ref_ld, rtol=1e-5, atol=1e-5))

    print("KERNEL_OK")
</pallas_src>

<mosaic_0001>
module attributes {stable_mosaic.version = 11 : i64} {
  func.func @masked_actnorm_kernel(%arg0: i32, %arg1: i32, %arg2: memref<2xi32, #tpu.memory_space<smem>>, %arg3: memref<2xf32, #tpu.memory_space<smem>>, %arg4: memref<1xf32, #tpu.memory_space<smem>>, %arg5: memref<1x8x128xf32, #tpu.memory_space<vmem>>, %arg6: memref<8x1xf32, #tpu.memory_space<vmem>>, %arg7: memref<8x1xf32, #tpu.memory_space<vmem>>, %arg8: memref<1x8x128xf32, #tpu.memory_space<vmem>>, %arg9: memref<1x1x128xf32, #tpu.memory_space<vmem>>) attributes {dimension_semantics = [#tpu.dimension_semantics<parallel>, #tpu.dimension_semantics<arbitrary>], iteration_bounds = array<i64: 2, 1>, scalar_prefetch = 0 : i64, scratch_operands = 0 : i64, tpu.core_type = #tpu.core_type<tc>, window_params = [{transform_indices = @transform_0, window_bounds = array<i64: 2>}, {transform_indices = @transform_1, window_bounds = array<i64: 2>}, {transform_indices = @transform_2, window_bounds = array<i64: 1>}, {transform_indices = @transform_3, window_bounds = array<i64: 1, 8, 128>}, {transform_indices = @transform_4, window_bounds = array<i64: 8, 1>}, {transform_indices = @transform_5, window_bounds = array<i64: 8, 1>}, {transform_indices = @transform_6, window_bounds = array<i64: 1, 8, 128>}, {transform_indices = @transform_7, window_bounds = array<i64: 1, 1, 128>}]} {
    %0 = arith.index_cast %arg0 : i32 to index
    %1 = memref.load %arg2[%0] : memref<2xi32, #tpu.memory_space<smem>>
    %c0_i32 = arith.constant 0 : i32
    %2 = arith.cmpi ne, %1, %c0_i32 : i32
    %3 = arith.extui %2 : i1 to i32
    %c0_i32_0 = arith.constant 0 : i32
    %4 = arith.cmpi ne, %3, %c0_i32_0 : i32
    scf.if %4 {
      %c0 = arith.constant 0 : index
      %c0_5 = arith.constant 0 : index
      %c0_6 = arith.constant 0 : index
      %11 = vector.load %arg5[%c0, %c0_5, %c0_6] : memref<1x8x128xf32, #tpu.memory_space<vmem>>, vector<1x8x128xf32>
      %c0_7 = arith.constant 0 : index
      %c0_8 = arith.constant 0 : index
      %12 = vector.load %arg6[%c0_7, %c0_8] : memref<8x1xf32, #tpu.memory_space<vmem>>, vector<8x1xf32>
      %13 = vector.shape_cast %12 : vector<8x1xf32> to vector<1x8x1xf32>
      %14 = vector.broadcast %13 : vector<1x8x1xf32> to vector<1x8x128xf32>
      %15 = arith.addf %11, %14 : vector<1x8x128xf32>
      %c0_9 = arith.constant 0 : index
      %c0_10 = arith.constant 0 : index
      %16 = vector.load %arg7[%c0_9, %c0_10] : memref<8x1xf32, #tpu.memory_space<vmem>>, vector<8x1xf32>
      %17 = vector.shape_cast %16 : vector<8x1xf32> to vector<1x8x1xf32>
      %18 = vector.broadcast %17 : vector<1x8x1xf32> to vector<1x8x128xf32>
      %19 = arith.mulf %15, %18 : vector<1x8x128xf32>
      %c0_11 = arith.constant 0 : index
      %c0_12 = arith.constant 0 : index
      %c0_13 = arith.constant 0 : index
      %20 = vector.load %arg8[%c0_11, %c0_12, %c0_13] : memref<1x8x128xf32, #tpu.memory_space<vmem>>, vector<1x8x128xf32>
      tpu.vector_store %arg8[%c0_11, %c0_12, %c0_13], %19 {strides = array<i32>} : memref<1x8x128xf32, #tpu.memory_space<vmem>>, vector<1x8x128xf32>,
    } else {
    }
    %c0_i32_1 = arith.constant 0 : i32
    %5 = arith.cmpi eq, %1, %c0_i32_1 : i32
    %6 = arith.extui %5 : i1 to i32
    %c0_i32_2 = arith.constant 0 : i32
    %7 = arith.cmpi ne, %6, %c0_i32_2 : i32
    scf.if %7 {
      %c0 = arith.constant 0 : index
      %c0_5 = arith.constant 0 : index
      %c0_6 = arith.constant 0 : index
      %11 = vector.load %arg5[%c0, %c0_5, %c0_6] : memref<1x8x128xf32, #tpu.memory_space<vmem>>, vector<1x8x128xf32>
      %c0_7 = arith.constant 0 : index
      %c0_8 = arith.constant 0 : index
      %c0_9 = arith.constant 0 : index
      %12 = vector.load %arg8[%c0_7, %c0_8, %c0_9] : memref<1x8x128xf32, #tpu.memory_space<vmem>>, vector<1x8x128xf32>
      tpu.vector_store %arg8[%c0_7, %c0_8, %c0_9], %11 {strides = array<i32>} : memref<1x8x128xf32, #tpu.memory_space<vmem>>, vector<1x8x128xf32>,
    } else {
    }
    %c0_i32_3 = arith.constant 0 : i32
    %8 = arith.cmpi eq, %arg1, %c0_i32_3 : i32
    %9 = arith.extui %8 : i1 to i32
    %c0_i32_4 = arith.constant 0 : i32
    %10 = arith.cmpi ne, %9, %c0_i32_4 : i32
    scf.if %10 {
      %11 = arith.index_cast %arg0 : i32 to index
      %12 = memref.load %arg3[%11] : memref<2xf32, #tpu.memory_space<smem>>
      %c0 = arith.constant 0 : index
      %13 = memref.load %arg4[%c0] : memref<1xf32, #tpu.memory_space<smem>>
      %14 = arith.sitofp %1 : i32 to f32
      %15 = arith.mulf %13, %14 : f32
      %16 = arith.addf %12, %15 : f32
      %17 = vector.broadcast %16 : f32 to vector<1x1x128xf32>
      %c0_5 = arith.constant 0 : index
      %c0_6 = arith.constant 0 : index
      %c0_7 = arith.constant 0 : index
      %18 = vector.load %arg9[%c0_5, %c0_6, %c0_7] : memref<1x1x128xf32, #tpu.memory_space<vmem>>, vector<1x1x128xf32>
      tpu.vector_store %arg9[%c0_5, %c0_6, %c0_7], %17 {strides = array<i32>} : memref<1x1x128xf32, #tpu.memory_space<vmem>>, vector<1x1x128xf32>,
    } else {
    }
    return
  }
  func.func @transform_0(%arg0: i32, %arg1: i32) -> i32 {
    %c0_i32 = arith.constant 0 : i32
    %c0_i32_0 = arith.constant 0 : i32
    return %c0_i32 : i32
  }
  func.func @transform_1(%arg0: i32, %arg1: i32) -> i32 {
    %c0_i32 = arith.constant 0 : i32
    %c0_i32_0 = arith.constant 0 : i32
    return %c0_i32 : i32
  }
  func.func @transform_2(%arg0: i32, %arg1: i32) -> i32 {
    %c0_i32 = arith.constant 0 : i32
    %c0_i32_0 = arith.constant 0 : i32
    return %c0_i32 : i32
  }
  func.func @transform_3(%arg0: i32, %arg1: i32) -> (i32, i32, i32) {
    %c0_i32 = arith.constant 0 : i32
    %c0_i32_0 = arith.constant 0 : i32
    return %arg0, %arg1, %c0_i32 : i32, i32, i32
  }
  func.func @transform_4(%arg0: i32, %arg1: i32) -> (i32, i32) {
    %c0_i32 = arith.constant 0 : i32
    %c0_i32_0 = arith.constant 0 : i32
    return %arg1, %c0_i32 : i32, i32
  }
  func.func @transform_5(%arg0: i32, %arg1: i32) -> (i32, i32) {
    %c0_i32 = arith.constant 0 : i32
    %c0_i32_0 = arith.constant 0 : i32
    return %arg1, %c0_i32 : i32, i32
  }
  func.func @transform_6(%arg0: i32, %arg1: i32) -> (i32, i32, i32) {
    %c0_i32 = arith.constant 0 : i32
    %c0_i32_0 = arith.constant 0 : i32
    return %arg0, %arg1, %c0_i32 : i32, i32, i32
  }
  func.func @transform_7(%arg0: i32, %arg1: i32) -> (i32, i32, i32) {
    %c0_i32 = arith.constant 0 : i32
    %c0_i32_0 = arith.constant 0 : i32
    %c0_i32_1 = arith.constant 0 : i32
    return %arg0, %c0_i32, %c0_i32_0 : i32, i32, i32
  }
}

</mosaic_0001>

<bundles_post_ra>
// kernel: masked_actnorm2d.1
= control target key start
LH: loop header
LB: loop body
LE: loop exit
PB: predicated region body
PF: predicated region fallthrough
CT: control target
= control target key end

     0   :  { %s834_s0 = inlined_call_operand.vmem [shape: s32[2], index: 0, kind: input, shape index: {}]   ;;  %s835_s1 = inlined_call_operand.vmem [shape: f32[2], index: 1, kind: input, shape index: {}]   ;;  %s836_s2 = inlined_call_operand.<no memory space> [shape: f32[1], index: 2, kind: input, shape index: {}]   ;;  %s837_s3 = inlined_call_operand.vmem [shape: f32[2,8,128], index: 3, kind: input, shape index: {}]   ;;  %s838_s4 = inlined_call_operand.vmem [shape: f32[8,1], index: 4, kind: input, shape index: {}]   ;;  %s839_s5 = inlined_call_operand.vmem [shape: f32[8,1], index: 5, kind: input, shape index: {}]   ;;  %s840_s6 = inlined_call_operand.vmem [shape: f32[2,8,128], index: 6, kind: output, shape index: {0}]   ;;  %s841_s7 = inlined_call_operand.vmem [shape: f32[2,1,128], index: 7, kind: output, shape index: {1}]  }
   0x1   :  { %13 = sst [smem:[#allocation2]] %s836_s2 }
   0x2   :  { %14 = vsyncpa [#allocation4], 0 }
   0x3   :  { %15 = vsyncpa [#allocation6], 0  ;;  %s738_s26 = smov 0   ;;  %s740_s27 = smov 0  }
   0x4   :  { %s742_s28 = smov 0  }
   0x5 LB: > { %s566_s2 = sadd.s32 4294967295, %s690_s28   ;;  %s33_s29 = sadd.s32 1, %s686_s27  ;;  %s690_s28 = sphi %s742_s28, %s21_s28   ;;  %s686_s27 = sphi %s740_s27, %s851_s27   ;;  %s682_s26 = sphi %s738_s26, %s850_s26  }
   0x6   : > { %p35_p0 = scmp.ge.s32.totalorder %s33_s29, 2  ;;  %p568_p1 = scmp.ge.s32.totalorder %s690_s28, 1 }
   0x7   : > { %p235_p2 = scmp.lt.s32.totalorder %s690_s28, 3  ;;  %p763_p4 = scmp.eq.s32.totalorder %s566_s2, 0 }
   0x8   : > { %s853_s29 = smov (%p35_p0, %s33_s29), 0  ;;  %s248_s11 = sshll.u32 %s834_s0, 4  ;;  %s249_s11 = int_to_ptr.vmem [resolvable:$true] %s248_s11 }
   0x9   : > { %p759_p3 = pnand %p568_p1, %p235_p2  ;;  %s259_s14 = sshll.u32 %s835_s1, 4  ;;  %s260_s14 = int_to_ptr.vmem [resolvable:$true] %s259_s14 }
   0xa   : > { %s846_s8 = scalar_select %p763_p4, 1, 0 }
   0xb   : > { %s845_s30 = scalar_select %p759_p3, 1, 0 }
   0xc   : > { %p591_p5 = pneg %p759_p3  ;;  %s630_s16 = scalar_lea.vmem %s249_s11, 16 }
   0xd   : > { %p631_p7 = scmp.ne.s32.totalorder %s249_s11, %s630_s16  ;;  %p638_p11 = scmp.lt.s32.totalorder %s249_s11, %s249_s11 }
   0xe   : > { %p777_p6 = pnand %p763_p4, %p591_p5  ;;  %p639_p12 = scmp.lt.s32.totalorder %s630_s16, %s630_s16 }
  0x10   : > { %p632_p8 = pneg %p777_p6  ;;  %p640_p13 = por %p639_p12, %p638_p11 }
  0x12   : > { %p633_p9 = pnand %p632_p8, %p631_p7 }
  0x14   : > { %p634_p10 = pneg %p633_p9 }
  0x16   : > { %p641_p0 = pnand %p640_p13, %p634_p10 }
  0x18   : > { %644 = shalt.err (!%p641_p0)
}
  0x19   : > { %s692_s17 = smov [#allocation3]   ;;  %s645_s18 = scalar_lea.vmem %s260_s14, 16 }
  0x1a   : > { %594 = dma.vmem_to_smem (!%p777_p6), %s249_s11, 16, %s692_s17, [#allocation4]  }
  0x1b   : > { %p646_p1 = scmp.ne.s32.totalorder %s260_s14, %s645_s18  ;;  %p653_p4 = scmp.lt.s32.totalorder %s260_s14, %s260_s14 }
  0x1c   : > { %p654_p3 = scmp.lt.s32.totalorder %s645_s18, %s645_s18 }
  0x1d   : > { %p648_p2 = pnand %p646_p1, %p632_p8 }
  0x1e   : > { %p655_p7 = por %p654_p3, %p653_p4 }
  0x1f   : > { %p649_p5 = pneg %p648_p2 }
  0x21   : > { %p656_p9 = pnand %p655_p7, %p649_p5 }
  0x23   : > { %659 = shalt.err (!%p656_p9)
}
  0x24   : > { %s693_s19 = smov [#allocation5]   ;;  %p848_p10 = scmp.ne.s32.totalorder %s845_s30, 0 }
  0x25   : > { %597 = dma.vmem_to_smem (!%p777_p6), %s260_s14, 16, %s693_s19, [#allocation6]  }
  0x26   : > { %299 = sbr.rel (%p848_p10) target bundleno = 216 (0xd8), region = 44  ;;  %p849_p11 = scmp.ne.s32.totalorder (!%p848_p10), %s846_s8, 0 }
  0x2d   : > { %673 = dma.done.wait (%p849_p11), [#allocation4], 16  }
  0x2e   : > { %675 = vsyncadd (%p849_p11), [#allocation4], 4294967280 }
  0x2f   : > { %677 = dma.done.wait (%p849_p11), [#allocation6], 16  }
  0x30   : > { %679 = vsyncadd (%p849_p11), [#allocation6], 4294967280 }
  0x31   : > { %309 = sfence }
  0x32   : > { %p351_p3 = scmp.lt.s32.totalorder %s682_s26, 1  ;;  %s799_s20 = sld [smem:[#allocation3 + %s682_s26]] }
  0x34   : > { %s802_s21 = scalar_select %p351_p3, %s682_s26, 1 }
  0x36   : > { %s577_s22 = sshll.u32 %s802_s21, 3  ;;  %s375_s25 = scalar_lea.vmem %s841_s7, %s802_s21 }
  0x37   : > { %s357_s8 = scalar_lea.vmem %s837_s3, %s577_s22  ;;  %s372_s11 = scalar_lea.vmem %s840_s6, %s577_s22 }
  0x38   : > { %p579_p4 = scmp.eq.s32.totalorder %s799_s20, 0 }
  0x39   : > { %v382_v0 = vld [vmem:[%s838_s4] sm:$0xff] (!%p579_p4)  ;;  %v694_v1 = vmov (!%p579_p4), 0  }
  0x3a   : > { %380 = sbr.rel (%p579_p4) target bundleno = 194 (0xc2), region = 56  ;;  %629 = vset.pattern.permute.xlu0 (!%p579_p4), %v694_v1  ;;  %v389_v2 = vld [vmem:[%s839_s5] sm:$0xff] (!%p579_p4) }
  0x3b   : > { %385 = vperm.xlu0 (!%p579_p4), %629, %v382_v0   ;;  %v381_v4 = vld [vmem:[%s357_s8] sm:$0xff] (!%p579_p4) }
  0x3f   : > { %392 = vperm.xlu0 (!%p579_p4), %629, %v389_v2  }
  0xba   : > { %v386_v3 = vpop.permute.xlu0 %385 }
  0xbb   : > { %v388_v5 = vadd.f32 %v386_v3, %v381_v4 }
  0xbe   : > { %v393_v6 = vpop.permute.xlu0 %392 }
  0xbf   : > { %v395_v7 = vmul.f32 %v393_v6, %v388_v5 }
  0xc1   : > { %396 = vst [vmem:[%s372_s11] sm:$0xff] %v395_v7 }
  0xc2 PF: > { %p580_p6 = scmp.ne.s32.totalorder %s799_s20, 0 }
  0xc3   : > { %v401_v8 = vld [vmem:[%s357_s8] sm:$0xff] (!%p580_p6) }
  0xc4   : > { %400 = sbr.rel (%p580_p6) target bundleno = 203 (0xcb), region = 60  ;;  %402 = vst [vmem:[%s372_s11] sm:$0xff] (!%p580_p6), %v401_v8 }
  0xcb PF: > { %s407_s16 = sld [smem:[#allocation5 + %s682_s26]]  ;;  %s409_s18 = scvt.s32.f32 %s799_s20 }
  0xcc   : > { %s408_s17 = sld [smem:[#allocation2]] }
  0xd2   : > { %s410_s19 = smul.f32 %s409_s18, %s408_s17 }
  0xd4   : > { %s411_s21 = sadd.f32 %s410_s19, %s407_s16 }
  0xd6   : > { %v412_v9 = vstv %s411_s21 }
  0xd7   : > { %413 = vst [vmem:[%s375_s25] sm:$0x1] %v412_v9 }
  0xd8 PF: > { %s21_s28 = sadd.s32 1, %s690_s28   ;;  %s850_s26 = smov %s686_s27 }
  0xd9   : > { %p18_p8 = scmp.ge.s32.totalorder %s21_s28, 4   ;;  %s851_s27 = smov %s853_s29 }
  0xdb   :  { %20 = sbr.rel (!%p18_p8) target bundleno = 5 (0x5), region = 113 }
  0xe2   :  { %451 = vsyncpa [#allocation4], 1 }
  0xe3   :  { %453 = vsyncpa [#allocation4 + $0x1], 1 }
  0xe4   :  { %454 = vsyncpa [#allocation6], 1 }

</bundles_post_ra>
